<compile_context>
chip_gen: v5e
topology: v5e:2x2
jax: 0.10.0
libtpu: 0.0.40
codegen_flags: <defaults>
</compile_context>

<pallas_src>
import math
from functools import partial

import jax
import jax.numpy as jnp
from jax.experimental import pallas as pl
from jax.experimental.pallas import tpu as pltpu

LANE = 128


def _round_up(x, m):
    return ((x + m - 1) // m) * m


def _gelu_exact(x):
    # Matches torch.nn.GELU(approximate='none'); evaluated in f32.
    return 0.5 * x * (1.0 + jax.lax.erf(x * (1.0 / math.sqrt(2.0))))


# ------------------------------ Pallas kernel --------------------------------

def _xy_encoder_kernel(*refs, num_layers, agg_scale):
    """One grid step = one batch element.

    refs = (xy, w0, b0, w1, b1, ..., w_{L-1}, b_{L-1}, out)
      xy  : [1, N, Din_pad]  concat(x, y), zero-padded, compute dtype
      w_i : padded weights (compute dtype); b_i : padded biases (f32;
            the last bias is pre-scaled by N when data_agg_func='sum')
      out : [1, 1, Dout_pad]
    """
    xy_ref = refs[0]
    out_ref = refs[-1]
    p = refs[1:-1]

    cdt = p[0].dtype                       # MXU operand dtype (f32 or bf16)
    h = xy_ref[0]                          # [N, Din_pad] in compute dtype

    # Hidden layers: MXU matmul with f32 accumulation, exact-erf GELU in f32.
    for layer in range(num_layers - 1):
        w = p[2 * layer][...]
        b = p[2 * layer + 1][...].astype(jnp.float32)
        h = jnp.dot(h.astype(cdt), w, preferred_element_type=jnp.float32) + b
        h = _gelu_exact(h)                 # f32 elementwise (v5e-safe)

    # Aggregate over the context axis BEFORE the last linear (exact for mean;
    # for sum the bias was pre-scaled by N).  Scale applied as an f32 scalar.
    pooled = jnp.sum(h, axis=0, keepdims=True) * jnp.float32(agg_scale)  # [1,H]

    w_last = p[2 * (num_layers - 1)][...]
    b_last = p[2 * (num_layers - 1) + 1][...].astype(jnp.float32)
    r = jnp.dot(pooled.astype(cdt), w_last,
                preferred_element_type=jnp.float32) + b_last   # [1, Dout_pad]

    out_ref[0] = r.astype(out_ref.dtype)


# ------------------------------- Forward pass ---------------------------------

@partial(jax.jit, static_argnames=("data_agg_func", "compute_dtype"))
def xy_encoder_forward(params, x_context, y_context, x_target=None, *,
                       data_agg_func="mean", compute_dtype=jnp.float32):
    """Equivalent of XYEncoder.forward for the x_encoder='mlp' config."""
    del x_target
    # TODO(synk): x_encoder == 'cnn' (unsqueeze) and data_agg_func ==
    # 'cross-attention' (nn.MultiheadAttention) branches not implemented;
    # the configured path is 'mlp' + 'mean'.
    B, N, Dx = x_context.shape
    Dy = y_context.shape[-1]
    num_layers = len(params)
    Dout = params[-1][0].shape[1]

    if data_agg_func == "mean":
        agg_scale, bias_scale = 1.0 / N, 1.0
    elif data_agg_func == "sum":
        # sum_n (h_n @ W + b) == (sum_n h_n) @ W + N * b
        agg_scale, bias_scale = 1.0, float(N)
    else:
        raise NotImplementedError(data_agg_func)

    din = Dx + Dy
    din_p = _round_up(din, 32)
    dout_p = _round_up(Dout, LANE)

    # Concat once in the wrapper; zero-pad K and cast to the MXU operand dtype.
    xy = jnp.concatenate([x_context, y_context], axis=-1)
    xy = jnp.pad(xy, ((0, 0), (0, 0), (0, din_p - din))).astype(compute_dtype)

    # Zero-pad every feature dim to 128 lanes (exact: pads stay 0 through GELU).
    padded = []
    in_dim_p = din_p
    for li, (w, b) in enumerate(params):
        fan_in, fan_out = w.shape
        out_dim_p = dout_p if li == num_layers - 1 else _round_up(fan_out, LANE)
        wp = jnp.pad(w, ((0, in_dim_p - fan_in), (0, out_dim_p - fan_out)))
        bp = jnp.pad(b, ((0, 0), (0, out_dim_p - fan_out))).astype(jnp.float32)
        if li == num_layers - 1:
            bp = bp * bias_scale
        padded += [wp.astype(compute_dtype), bp]
        in_dim_p = out_dim_p

    kernel = partial(_xy_encoder_kernel, num_layers=num_layers,
                     agg_scale=agg_scale)

    r = pl.pallas_call(
        kernel,
        out_shape=jax.ShapeDtypeStruct((B, 1, dout_p), x_context.dtype),
        grid=(B,),
        in_specs=(
            # One batch element's context rows per grid step.
            [pl.BlockSpec((1, N, din_p), lambda b: (b, 0, 0))]
            # Weights/biases: full blocks, constant index_map -> VMEM-resident.
            + [pl.BlockSpec(a.shape, lambda b: (0, 0)) for a in padded]),
        out_specs=pl.BlockSpec((1, 1, dout_p), lambda b: (b, 0, 0)),
        compiler_params=pltpu.CompilerParams(
            dimension_semantics=("parallel",)),   # v7x: split batch across TCs
    )(xy, *padded)

    return r[:, :, :Dout]                         # drop lane padding; keepdim=True


# ------------------------------ Parameter init --------------------------------

def init_linear(key, fan_in, fan_out, dtype=jnp.float32):
    """torch.nn.Linear default init; weight stored transposed as [in, out],
    bias stored as (1, out)."""
    kw, kb = jax.random.split(key)
    bound = 1.0 / math.sqrt(fan_in)
    w = jax.random.uniform(kw, (fan_in, fan_out), dtype, minval=-bound, maxval=bound)
    b = jax.random.uniform(kb, (1, fan_out), dtype, minval=-bound, maxval=bound)
    return w, b


class Config:
    x_encoder = "mlp"
    x_transf_dim = 16
    output_dim = 4
    xy_encoder_hidden_dim = 64
    xy_encoder_num_hidden = 2
    hidden_dim = 64
    data_agg_func = "mean"


def init_xy_encoder_params(key, cfg):
    dims = ([cfg.x_transf_dim + cfg.output_dim]
            + [cfg.xy_encoder_hidden_dim] * cfg.xy_encoder_num_hidden
            + [cfg.hidden_dim])
    params = []
    for i in range(len(dims) - 1):
        key, sub = jax.random.split(key)
        params.append(init_linear(sub, dims[i], dims[i + 1]))
    return params


# Pure-JAX reference (sanity check only).
def xy_encoder_ref(params, x_context, y_context, x_target=None, data_agg_func="mean"):
    h = jnp.concatenate([x_context, y_context], axis=-1)
    n = len(params)
    for i, (w, b) in enumerate(params):
        h = h @ w + b
        if i < n - 1:
            h = _gelu_exact(h)
    if data_agg_func == "mean":
        return jnp.mean(h, axis=1, keepdims=True)
    elif data_agg_func == "sum":
        return jnp.sum(h, axis=1, keepdims=True)
    raise NotImplementedError(data_agg_func)


if __name__ == "__main__":
    cfg = Config()
    key = jax.random.PRNGKey(0)
    kp, kx, ky, kt = jax.random.split(key, 4)

    params = init_xy_encoder_params(kp, cfg)

    B, N, M = 2, 8, 4
    x_context = jax.random.normal(kx, (B, N, cfg.x_transf_dim), dtype=jnp.float32)
    y_context = jax.random.normal(ky, (B, N, cfg.output_dim), dtype=jnp.float32)
    x_target = jax.random.normal(kt, (B, M, cfg.x_transf_dim), dtype=jnp.float32)

    # 1) f32 MXU operands, mean aggregation (the configured path) -- exact.
    out = jax.block_until_ready(
        xy_encoder_forward(params, x_context, y_context, x_target,
                           data_agg_func="mean", compute_dtype=jnp.float32))
    ref = xy_encoder_ref(params, x_context, y_context, x_target, "mean")
    assert out.shape == (B, 1, cfg.hidden_dim), out.shape
    assert jnp.allclose(out, ref, atol=1e-4, rtol=1e-4), \
        float(jnp.max(jnp.abs(out - ref)))

    # 2) sum aggregation (exercises the pre-scaled last bias).
    out_s = jax.block_until_ready(
        xy_encoder_forward(params, x_context, y_context, x_target,
                           data_agg_func="sum", compute_dtype=jnp.float32))
    ref_s = xy_encoder_ref(params, x_context, y_context, x_target, "sum")
    assert jnp.allclose(out_s, ref_s, atol=1e-3, rtol=1e-4), \
        float(jnp.max(jnp.abs(out_s - ref_s)))

    # 3) bf16 MXU operands (native v6e/v7x path); f32 accumulation + f32 GELU.
    out_bf = jax.block_until_ready(
        xy_encoder_forward(params, x_context, y_context, x_target,
                           data_agg_func="mean", compute_dtype=jnp.bfloat16))
    assert jnp.allclose(out_bf.astype(jnp.float32), ref, atol=5e-2, rtol=5e-2), \
        float(jnp.max(jnp.abs(out_bf.astype(jnp.float32) - ref)))

    print("KERNEL_OK")
</pallas_src>

<mosaic_0001>
module attributes {stable_mosaic.version = 11 : i64} {
  func.func @_xy_encoder_kernel(%arg0: i32, %arg1: memref<1x8x32xf32, #tpu.memory_space<vmem>>, %arg2: memref<32x128xf32, #tpu.memory_space<vmem>>, %arg3: memref<1x128xf32, #tpu.memory_space<vmem>>, %arg4: memref<128x128xf32, #tpu.memory_space<vmem>>, %arg5: memref<1x128xf32, #tpu.memory_space<vmem>>, %arg6: memref<128x128xf32, #tpu.memory_space<vmem>>, %arg7: memref<1x128xf32, #tpu.memory_space<vmem>>, %arg8: memref<1x1x128xf32, #tpu.memory_space<vmem>>) attributes {dimension_semantics = [#tpu.dimension_semantics<parallel>], iteration_bounds = array<i64: 2>, scalar_prefetch = 0 : i64, scratch_operands = 0 : i64, tpu.core_type = #tpu.core_type<tc>, window_params = [{transform_indices = @transform_0, window_bounds = array<i64: 1, 8, 32>}, {pipeline_mode = #tpu.pipeline_mode<synchronous>, transform_indices = @transform_1, window_bounds = array<i64: 32, 128>}, {pipeline_mode = #tpu.pipeline_mode<synchronous>, transform_indices = @transform_2, window_bounds = array<i64: 1, 128>}, {pipeline_mode = #tpu.pipeline_mode<synchronous>, transform_indices = @transform_3, window_bounds = array<i64: 128, 128>}, {pipeline_mode = #tpu.pipeline_mode<synchronous>, transform_indices = @transform_4, window_bounds = array<i64: 1, 128>}, {pipeline_mode = #tpu.pipeline_mode<synchronous>, transform_indices = @transform_5, window_bounds = array<i64: 128, 128>}, {pipeline_mode = #tpu.pipeline_mode<synchronous>, transform_indices = @transform_6, window_bounds = array<i64: 1, 128>}, {transform_indices = @transform_7, window_bounds = array<i64: 1, 1, 128>}]} {
    %c0 = arith.constant 0 : index
    %c0_0 = arith.constant 0 : index
    %c0_1 = arith.constant 0 : index
    %0 = vector.load %arg1[%c0, %c0_0, %c0_1] : memref<1x8x32xf32, #tpu.memory_space<vmem>>, vector<1x8x32xf32>
    %1 = vector.shape_cast %0 : vector<1x8x32xf32> to vector<8x32xf32>
    %c0_2 = arith.constant 0 : index
    %c0_3 = arith.constant 0 : index
    %2 = vector.load %arg2[%c0_2, %c0_3] : memref<32x128xf32, #tpu.memory_space<vmem>>, vector<32x128xf32>
    %c0_4 = arith.constant 0 : index
    %c0_5 = arith.constant 0 : index
    %3 = vector.load %arg3[%c0_4, %c0_5] : memref<1x128xf32, #tpu.memory_space<vmem>>, vector<1x128xf32>
    %cst = arith.constant dense<0.000000e+00> : vector<8x128xf32>
    %4 = tpu.matmul %1, %2, %cst {dimension_numbers = #tpu.dot_dimension_numbers<[1], [0], [0], [1], [0, 0, 1, 1], [], []>} : vector<8x32xf32>, vector<32x128xf32>, vector<8x128xf32> -> vector<8x128xf32>
    %5 = vector.broadcast %3 : vector<1x128xf32> to vector<8x128xf32>
    %6 = arith.addf %4, %5 : vector<8x128xf32>
    %cst_6 = arith.constant 5.000000e-01 : f32
    %7 = vector.broadcast %cst_6 : f32 to vector<8x128xf32>
    %8 = arith.mulf %7, %6 : vector<8x128xf32>
    %cst_7 = arith.constant 0.707106769 : f32
    %9 = vector.broadcast %cst_7 : f32 to vector<8x128xf32>
    %10 = arith.mulf %6, %9 : vector<8x128xf32>
    %11 = math.erf %10 : vector<8x128xf32>
    %cst_8 = arith.constant 1.000000e+00 : f32
    %12 = vector.broadcast %cst_8 : f32 to vector<8x128xf32>
    %13 = arith.addf %12, %11 : vector<8x128xf32>
    %14 = arith.mulf %8, %13 : vector<8x128xf32>
    %c0_9 = arith.constant 0 : index
    %c0_10 = arith.constant 0 : index
    %15 = vector.load %arg4[%c0_9, %c0_10] : memref<128x128xf32, #tpu.memory_space<vmem>>, vector<128x128xf32>
    %c0_11 = arith.constant 0 : index
    %c0_12 = arith.constant 0 : index
    %16 = vector.load %arg5[%c0_11, %c0_12] : memref<1x128xf32, #tpu.memory_space<vmem>>, vector<1x128xf32>
    %cst_13 = arith.constant dense<0.000000e+00> : vector<8x128xf32>
    %17 = tpu.matmul %14, %15, %cst_13 {dimension_numbers = #tpu.dot_dimension_numbers<[1], [0], [0], [1], [0, 0, 1, 1], [], []>} : vector<8x128xf32>, vector<128x128xf32>, vector<8x128xf32> -> vector<8x128xf32>
    %18 = vector.broadcast %16 : vector<1x128xf32> to vector<8x128xf32>
    %19 = arith.addf %17, %18 : vector<8x128xf32>
    %cst_14 = arith.constant 5.000000e-01 : f32
    %20 = vector.broadcast %cst_14 : f32 to vector<8x128xf32>
    %21 = arith.mulf %20, %19 : vector<8x128xf32>
    %cst_15 = arith.constant 0.707106769 : f32
    %22 = vector.broadcast %cst_15 : f32 to vector<8x128xf32>
    %23 = arith.mulf %19, %22 : vector<8x128xf32>
    %24 = math.erf %23 : vector<8x128xf32>
    %cst_16 = arith.constant 1.000000e+00 : f32
    %25 = vector.broadcast %cst_16 : f32 to vector<8x128xf32>
    %26 = arith.addf %25, %24 : vector<8x128xf32>
    %27 = arith.mulf %21, %26 : vector<8x128xf32>
    %cst_17 = arith.constant dense<0.000000e+00> : vector<128xf32>
    %28 = vector.multi_reduction <add>, %27, %cst_17 [0] : vector<8x128xf32> to vector<128xf32>
    %29 = vector.shape_cast %28 : vector<128xf32> to vector<1x128xf32>
    %cst_18 = arith.constant 1.250000e-01 : f32
    %30 = vector.broadcast %cst_18 : f32 to vector<1x128xf32>
    %31 = arith.mulf %29, %30 : vector<1x128xf32>
    %c0_19 = arith.constant 0 : index
    %c0_20 = arith.constant 0 : index
    %32 = vector.load %arg6[%c0_19, %c0_20] : memref<128x128xf32, #tpu.memory_space<vmem>>, vector<128x128xf32>
    %c0_21 = arith.constant 0 : index
    %c0_22 = arith.constant 0 : index
    %33 = vector.load %arg7[%c0_21, %c0_22] : memref<1x128xf32, #tpu.memory_space<vmem>>, vector<1x128xf32>
    %cst_23 = arith.constant dense<0.000000e+00> : vector<1x128xf32>
    %34 = tpu.matmul %31, %32, %cst_23 {dimension_numbers = #tpu.dot_dimension_numbers<[1], [0], [0], [1], [0, 0, 1, 1], [], []>} : vector<1x128xf32>, vector<128x128xf32>, vector<1x128xf32> -> vector<1x128xf32>
    %35 = arith.addf %34, %33 : vector<1x128xf32>
    %c0_24 = arith.constant 0 : index
    %c0_25 = arith.constant 0 : index
    %c0_26 = arith.constant 0 : index
    %36 = vector.load %arg8[%c0_24, %c0_25, %c0_26] : memref<1x1x128xf32, #tpu.memory_space<vmem>>, vector<1x1x128xf32>
    %37 = vector.shape_cast %36 : vector<1x1x128xf32> to vector<1x128xf32>
    %38 = vector.shape_cast %35 : vector<1x128xf32> to vector<1x1x128xf32>
    tpu.vector_store %arg8[%c0_24, %c0_25, %c0_26], %38 {strides = array<i32>} : memref<1x1x128xf32, #tpu.memory_space<vmem>>, vector<1x1x128xf32>,
    return
  }
  func.func @transform_0(%arg0: i32) -> (i32, i32, i32) {
    %c0_i32 = arith.constant 0 : i32
    %c0_i32_0 = arith.constant 0 : i32
    %c0_i32_1 = arith.constant 0 : i32
    return %arg0, %c0_i32, %c0_i32_0 : i32, i32, i32
  }
  func.func @transform_1(%arg0: i32) -> (i32, i32) {
    %c0_i32 = arith.constant 0 : i32
    %c0_i32_0 = arith.constant 0 : i32
    %c0_i32_1 = arith.constant 0 : i32
    return %c0_i32, %c0_i32_0 : i32, i32
  }
  func.func @transform_2(%arg0: i32) -> (i32, i32) {
    %c0_i32 = arith.constant 0 : i32
    %c0_i32_0 = arith.constant 0 : i32
    %c0_i32_1 = arith.constant 0 : i32
    return %c0_i32, %c0_i32_0 : i32, i32
  }
  func.func @transform_3(%arg0: i32) -> (i32, i32) {
    %c0_i32 = arith.constant 0 : i32
    %c0_i32_0 = arith.constant 0 : i32
    %c0_i32_1 = arith.constant 0 : i32
    return %c0_i32, %c0_i32_0 : i32, i32
  }
  func.func @transform_4(%arg0: i32) -> (i32, i32) {
    %c0_i32 = arith.constant 0 : i32
    %c0_i32_0 = arith.constant 0 : i32
    %c0_i32_1 = arith.constant 0 : i32
    return %c0_i32, %c0_i32_0 : i32, i32
  }
  func.func @transform_5(%arg0: i32) -> (i32, i32) {
    %c0_i32 = arith.constant 0 : i32
    %c0_i32_0 = arith.constant 0 : i32
    %c0_i32_1 = arith.constant 0 : i32
    return %c0_i32, %c0_i32_0 : i32, i32
  }
  func.func @transform_6(%arg0: i32) -> (i32, i32) {
    %c0_i32 = arith.constant 0 : i32
    %c0_i32_0 = arith.constant 0 : i32
    %c0_i32_1 = arith.constant 0 : i32
    return %c0_i32, %c0_i32_0 : i32, i32
  }
  func.func @transform_7(%arg0: i32) -> (i32, i32, i32) {
    %c0_i32 = arith.constant 0 : i32
    %c0_i32_0 = arith.constant 0 : i32
    %c0_i32_1 = arith.constant 0 : i32
    return %arg0, %c0_i32, %c0_i32_0 : i32, i32, i32
  }
}

</mosaic_0001>

<bundles_post_ra>
// kernel: xy_encoder_forward.1
= control target key start
LH: loop header
LB: loop body
LE: loop exit
PB: predicated region body
PF: predicated region fallthrough
CT: control target
= control target key end

     0   :  { %12 = vsyncpa [#allocation3], 0  ;;  %s917_s0 = inlined_call_operand.vmem [shape: f32[2,8,32], index: 0, kind: input, shape index: {}]   ;;  %s918_s1 = inlined_call_operand.vmem [shape: f32[32,128], index: 1, kind: input, shape index: {}]   ;;  %s919_s2 = inlined_call_operand.vmem [shape: f32[1,128], index: 2, kind: input, shape index: {}]   ;;  %s920_s3 = inlined_call_operand.vmem [shape: f32[128,128], index: 3, kind: input, shape index: {}]   ;;  %s921_s4 = inlined_call_operand.vmem [shape: f32[1,128], index: 4, kind: input, shape index: {}]   ;;  %s922_s5 = inlined_call_operand.vmem [shape: f32[128,128], index: 5, kind: input, shape index: {}]   ;;  %s923_s6 = inlined_call_operand.vmem [shape: f32[1,128], index: 6, kind: input, shape index: {}]   ;;  %s924_s7 = inlined_call_operand.hbm [shape: f32[2,1,128], index: 7, kind: output, shape index: {}]  }
   0x1   :  { %14 = vsyncpa [#allocation3 + $0x1], 0  ;;  %s706_s24 = smov 0   ;;  %s708_s25 = smov 0  }
   0x2   :  { %s710_s26 = smov 0   ;;  %s712_s27 = smov 0  }
   0x3 LB: > { %s727_s28 = sadd.s32 4294967295, %s664_s27   ;;  %s547_s29 = sadd.s32 4294967294, %s664_s27   ;;  %s664_s27 = sphi %s712_s27, %s930_s27   ;;  %s660_s26 = sphi %s710_s26, %s929_s26   ;;  %s656_s25 = sphi %s708_s25, %s928_s25   ;;  %s652_s24 = sphi %s706_s24, %s927_s24  }
   0x4   : > { %s731_s30 = sadd.s32 1, %s664_s27   ;;  %s179_s8 = sadd.s32 1, %s660_s26 }
   0x5   : > { %s176_s9 = ssub.s32 %s664_s27, %s731_s30  ;;  %p189_p0 = scmp.ne.s32.totalorder %s660_s26, %s656_s25 }
   0x6   : > { %p177_p1 = scmp.eq.s32.totalorder %s176_s9, 0  ;;  %p190_p2 = scmp.eq.s32.totalorder %s727_s28, 1 }
   0x7   : > { %p195_p3 = scmp.ne.s32.totalorder %s656_s25, %s652_s24  ;;  %p196_p4 = scmp.eq.s32.totalorder %s547_s29, 1 }
   0x8   : > { %s742_s10 = scalar_select %p177_p1, %s660_s26, %s179_s8  }
   0x9   : > { %p744_p5 = por %p190_p2, %p189_p0  ;;  %p748_p6 = por %p196_p4, %p195_p3 }
   0xa   : > { %p550_p7 = scmp.ge.s32.totalorder %s664_s27, 1  ;;  %p239_p8 = scmp.lt.s32.totalorder %s664_s27, 3 }
   0xc   : > { %p240_p9 = pnand %p550_p7, %p239_p8 }
   0xd   : > { %p269_p10 = scmp.lt.s32.totalorder (!%p240_p9), %s727_s28, 1  ;;  %s267_s29 = sand.u32 (!%p240_p9), 1, %s656_s25  }
   0xe   : > { %243 = sbr.rel (%p240_p9) target bundleno = 536 (0x218), region = 48  ;;  %s488_s13 = scalar_lea.hbm (!%p240_p9), %s924_s7, %s727_s28 }
   0xf   : > { %s268_s16 = scalar_lea.vmem (!%p240_p9), [#allocation2], %s267_s29  ;;  %s492_s18 = sshll.u32 (!%p240_p9), %s488_s13, 4  ;;  %s493_s18 = int_to_ptr.hbm [resolvable:$true] %s492_s18 }
  0x10   : > { %s490_s17 = sshll.u32 (!%p240_p9), %s268_s16, 4  ;;  %s616_s20 = sshra.s32 (!%p240_p9), %s493_s18, 4  ;;  %s491_s17 = int_to_ptr.vmem [resolvable:$true] %s490_s17  ;;  %s617_s20 = int_to_ptr.hbm [resolvable:$true] %s616_s20 }
  0x11   : > { %s618_s21 = scalar_lea.hbm (!%p240_p9), %s617_s20, 1  ;;  %s622_s23 = scalar_lea.hbm (!%p240_p9), %s924_s7, 2 }
  0x12   : > { %p619_p11 = scmp.ne.s32.totalorder (!%p240_p9), %s617_s20, %s618_s21  ;;  %p623_p0 = scmp.lt.s32.totalorder (!%p240_p9), %s617_s20, %s924_s7 }
  0x13   : > { %v277_v0 = vld [vmem:[%s918_s1 + $0x18] sm:$0xff]  ;;  %v276_v1 = vld [vmem:[%s918_s1 + $0x10] sm:$0xff]  ;;  %v275_v2 = vld [vmem:[%s918_s1 + $0x8] sm:$0xff]  ;;  %s270_s19 = scalar_select %p269_p10, %s727_s28, 1  ;;  %vm282_vm0 = vcmask 261120  }
  0x14   : > { %298 = vmatpush.msra.mxu0 %v277_v0  ;;  %v274_v3 = vld [vmem:[%s918_s1] sm:$0xff]  ;;  %v365_v5 = vld [vmem:[%s920_s3 + $0x78] sm:$0xff]  ;;  %v364_v6 = vld [vmem:[%s920_s3 + $0x70] sm:$0xff]  ;;  %p620_p12 = pnand %p619_p11, %p744_p5  ;;  %p624_p1 = scmp.lt.s32.totalorder %s622_s23, %s618_s21 }
  0x15   : > { %s551_s22 = sshll.u32 %s270_s19, 3  ;;  %370 = vmatpush.msra.mxu1 %v365_v5  ;;  %v363_v7 = vld [vmem:[%s920_s3 + $0x68] sm:$0xff]  ;;  %v362_v8 = vld [vmem:[%s920_s3 + $0x60] sm:$0xff]  ;;  %v361_v10 = vld [vmem:[%s920_s3 + $0x58] sm:$0xff]  ;;  %s480_s19 = scalar_lea.sflag [#allocation3], %s267_s29 }
  0x16   : > { %299 = vmatpush.msra.mxu0 %v276_v1  ;;  %s272_s8 = scalar_lea.vmem %s917_s0, %s551_s22  ;;  %v596_v9 = vld [vmem:[%s919_s2] ss:$0 sm:$0xff]  ;;  %v360_v11 = vld [vmem:[%s920_s3 + $0x50] sm:$0xff]  ;;  %v359_v13 = vld [vmem:[%s920_s3 + $0x48] sm:$0xff]  ;;  %p621_p13 = pneg %p620_p12 }
  0x17   : > { %v273_v4 = vld [vmem:[%s272_s8] sm:$0xff]  ;;  %371 = vmatpush.msra.mxu1 %v364_v6  ;;  %v357_v17 = vld [vmem:[%s920_s3 + $0x38] sm:$0xff]  ;;  %v356_v19 = vld [vmem:[%s920_s3 + $0x30] sm:$0xff]  ;;  %p625_p2 = por %p624_p1, %p623_p0 }
  0x18   : > { %300 = vmatpush.msra.mxu0 %v275_v2  ;;  %v358_v15 = vld [vmem:[%s920_s3 + $0x40] sm:$0xff]  ;;  %v355_v21 = vld [vmem:[%s920_s3 + $0x28] sm:$0xff]  ;;  %v353_v27 = vld [vmem:[%s920_s3 + $0x18] sm:$0xff] }
  0x19   : > { %372 = vmatpush.msra.mxu1 %v363_v7  ;;  %v354_v24 = vld [vmem:[%s920_s3 + $0x20] sm:$0xff]  ;;  %v352_v30 = vld [vmem:[%s920_s3 + $0x10] sm:$0xff]  ;;  %v351_v33 = vld [vmem:[%s920_s3 + $0x8] sm:$0xff]  ;;  %p626_p3 = pnand %p625_p2, %p621_p13 }
  0x1a   : > { %301 = vmatpush.msra.mxu0 %v274_v3  ;;  %v350_v35 = vld [vmem:[%s920_s3] sm:$0xff]  ;;  %v455_v6 = vld [vmem:[%s922_s5 + $0x70] sm:$0xff] }
  0x1b   : > { %552 = vmatmul.msk.f32.vlgmr.msra.gmra.mxu0 %vm282_vm0, %v273_v4  ;;  %373 = vmatpush.msra.mxu1 %v362_v8  ;;  %v597_v63 = vld [vmem:[%s921_s4] ss:$0 sm:$0xff]  ;;  %v456_v4 = vld [vmem:[%s922_s5 + $0x78] sm:$0xff] }
  0x1c   : > { %458 = vmatpush.msra.mxu2 %v456_v4 }
  0x1d   : > { %374 = vmatpush.msra.mxu1 %v361_v10 }
  0x1e   : > { %459 = vmatpush.msra.mxu2 %v455_v6 }
  0x1f   : > { %375 = vmatpush.msra.mxu1 %v360_v11 }
  0x21   : > { %376 = vmatpush.msra.mxu1 %v359_v13 }
  0x23   : > { %377 = vmatpush.msra.mxu1 %v358_v15  ;;  %v452_v15 = vld [vmem:[%s922_s5 + $0x58] sm:$0xff] }
  0x25   : > { %378 = vmatpush.msra.mxu1 %v357_v17  ;;  %v451_v17 = vld [vmem:[%s922_s5 + $0x50] sm:$0xff] }
  0x27   : > { %379 = vmatpush.msra.mxu1 %v356_v19 }
  0x29   : > { %380 = vmatpush.msra.mxu1 %v355_v21 }
  0x2b   : > { %381 = vmatpush.msra.mxu1 %v354_v24 }
  0x2d   : > { %382 = vmatpush.msra.mxu1 %v353_v27 }
  0x2f   : > { %383 = vmatpush.msra.mxu1 %v352_v30 }
  0x31   : > { %384 = vmatpush.msra.mxu1 %v351_v33  ;;  %v444_v33 = vld [vmem:[%s922_s5 + $0x18] sm:$0xff] }
  0x33   : > { %385 = vmatpush.msra.mxu1 %v350_v35  ;;  %v443_v35 = vld [vmem:[%s922_s5 + $0x10] sm:$0xff] }
  0x98   : > { %v303_v12 = vpop.f32.mrf.mxu0 }
  0x99   : > { %v304_v14 = vadd.f32 %v596_v9, %v303_v12  ;;  %v454_v9 = vld [vmem:[%s922_s5 + $0x68] sm:$0xff]  ;;  %v453_v12 = vld [vmem:[%s922_s5 + $0x60] sm:$0xff] }
  0x9a   : > { %460 = vmatpush.msra.mxu2 %v454_v9 }
  0x9b   : > { %v307_v16 = vmul.f32 0.70710677, %v304_v14  ;;  %v306_v60 = vmul.f32 0.5, %v304_v14 }
  0x9c   : > { %461 = vmatpush.msra.mxu2 %v453_v12 }
  0x9d   : > { %v308_v18 = vmul.f32 %v307_v16, %v307_v16 }
  0x9e   : > { %462 = vmatpush.msra.mxu2 %v452_v15 }
  0x9f   : > { %v309_v20 = vmin.f32 %v308_v18, 16.0 }
  0xa0   : > { %463 = vmatpush.msra.mxu2 %v451_v17 }
  0xa1   : > { %v310_v22 = vmul.f32 2.1237322e-06, %v309_v20  ;;  %v321_v23 = vmul.f32 3.8918573e-05, %v309_v20 }
  0xa3   : > { %v311_v25 = vadd.f32 0.00028619796, %v310_v22  ;;  %v322_v26 = vadd.f32 0.001143296, %v321_v23  ;;  %v449_v22 = vld [vmem:[%s922_s5 + $0x40] sm:$0xff] }
  0xa5   : > { %v312_v28 = vmul.f32 %v311_v25, %v309_v20  ;;  %v323_v29 = vmul.f32 %v322_v26, %v309_v20  ;;  %v448_v25 = vld [vmem:[%s922_s5 + $0x38] sm:$0xff]  ;;  %v447_v26 = vld [vmem:[%s922_s5 + $0x30] sm:$0xff] }
  0xa7   : > { %v324_v31 = vadd.f32 0.014752088, %v323_v29  ;;  %v313_v32 = vadd.f32 0.0036580483, %v312_v28  ;;  %v446_v28 = vld [vmem:[%s922_s5 + $0x28] sm:$0xff] }
  0xa9   : > { %v325_v34 = vmul.f32 %v324_v31, %v309_v20  ;;  %v314_v37 = vmul.f32 %v313_v32, %v309_v20  ;;  %v445_v31 = vld [vmem:[%s922_s5 + $0x20] sm:$0xff] }
  0xab   : > { %v326_v36 = vadd.f32 0.112945676, %v325_v34  ;;  %v315_v40 = vadd.f32 0.05243302, %v314_v37 }
  0xad   : > { %v327_v38 = vmul.f32 %v326_v36, %v309_v20  ;;  %v316_v43 = vmul.f32 %v315_v40, %v309_v20  ;;  %v442_v36 = vld [vmem:[%s922_s5 + $0x8] sm:$0xff] }
  0xaf   : > { %v328_v39 = vadd.f32 0.4994258, %v327_v38  ;;  %v317_v44 = vadd.f32 0.18741608, %v316_v43  ;;  %v441_v38 = vld [vmem:[%s922_s5] sm:$0xff] }
  0xb1   : > { %v329_v41 = vmul.f32 %v328_v39, %v309_v20  ;;  %v318_v46 = vmul.f32 %v317_v44, %v309_v20  ;;  %v450_v20 = vld [vmem:[%s922_s5 + $0x48] sm:$0xff] }
  0xb2   : > { %464 = vmatpush.msra.mxu2 %v450_v20 }
  0xb3   : > { %v330_v42 = vadd.f32 1.0, %v329_v41  ;;  %v319_v50 = vadd.f32 1.1283791, %v318_v46 }
  0xb4   : > { %465 = vmatpush.msra.mxu2 %v449_v22 }
  0xb5   : > { %598 = vrcp.f32 %v330_v42  ;;  %v342_v49 = vand.u32 2147483648, %v330_v42  ;;  %v340_v52 = vand.u32 2147483647, %v330_v42  ;;  %vm336_vm2 = vweird.f32 %v330_v42 }
  0xb6   : > { %v320_v55 = vmul.f32 %v319_v50, %v307_v16  ;;  %466 = vmatpush.msra.mxu2 %v448_v25 }
  0xb7   : > { %v343_v54 = vor.u32 1.1754944e-38, %v342_v49  ;;  %vm341_vm4 = vcmp.eq.f32.partialorder %v340_v52, 8.507059e+37 }
  0xb8   : > { %467 = vmatpush.msra.mxu2 %v447_v26 }
  0xba   : > { %468 = vmatpush.msra.mxu2 %v446_v28 }
  0xbb   : > { %v599_v45 = vpop.eup %598 }
  0xbc   : > { %v332_v47 = vmul.f32 %v599_v45, %v330_v42  ;;  %vm337_vm1 = vweird.f32 %v599_v45  ;;  %469 = vmatpush.msra.mxu2 %v445_v31 }
  0xbd   : > { %vm338_vm3 = vmor %vm336_vm2, %vm337_vm1 }
  0xbe   : > { %v333_v48 = vsub.f32 1.0, %v332_v47  ;;  %470 = vmatpush.msra.mxu2 %v444_v33 }
  0xc0   : > { %v334_v51 = vmul.f32 %v599_v45, %v333_v48  ;;  %471 = vmatpush.msra.mxu2 %v443_v35 }
  0xc2   : > { %v335_v53 = vadd.f32 %v599_v45, %v334_v51  ;;  %472 = vmatpush.msra.mxu2 %v442_v36 }
  0xc4   : > { %v339_v56 = vsel %vm338_vm3, %v599_v45, %v335_v53  ;;  %473 = vmatpush.msra.mxu2 %v441_v38 }
  0xc5   : > { %v344_v57 = vsel %vm341_vm4, %v343_v54, %v339_v56 }
  0xc6   : > { %v345_v58 = vmul.f32 %v344_v57, %v320_v55 }
  0xc8   : > { %v553_v59 = vclamps-f32 %v345_v58, 1.0 }
  0xca   : > { %v348_v61 = vadd.f32 1.0, %v553_v59 }
  0xcc   : > { %v349_v62 = vmul.f32 %v348_v61, %v306_v60 }
  0xce   : > { %386 = vmatmul.f32.vlgmr.msra.gmra.mxu1 %v349_v62 }
 0x14b   : > { %v387_v0 = vpop.f32.mrf.mxu1 }
 0x14c   : > { %v825_v1 = vadd.f32 %v597_v63, %v387_v0  ;;  %v457_v0 = vld [vmem:[%s923_s6] sm:$0x1] }
 0x14e   : > { %v828_v2 = vmul.f32 0.70710677, %v825_v1  ;;  %v390_v54 = vmul.f32 0.5, %v825_v1 }
 0x150   : > { %v392_v3 = vmul.f32 %v828_v2, %v828_v2 }
 0x152   : > { %v393_v5 = vmin.f32 %v392_v3, 16.0 }
 0x154   : > { %v394_v7 = vmul.f32 2.1237322e-06, %v393_v5  ;;  %v405_v8 = vmul.f32 3.8918573e-05, %v393_v5 }
 0x156   : > { %v395_v10 = vadd.f32 0.00028619796, %v394_v7  ;;  %v406_v11 = vadd.f32 0.001143296, %v405_v8 }
 0x158   : > { %v396_v13 = vmul.f32 %v395_v10, %v393_v5  ;;  %v407_v14 = vmul.f32 %v406_v11, %v393_v5 }
 0x15a   : > { %v408_v16 = vadd.f32 0.014752088, %v407_v14  ;;  %v397_v18 = vadd.f32 0.0036580483, %v396_v13 }
 0x15c   : > { %v409_v19 = vmul.f32 %v408_v16, %v393_v5  ;;  %v398_v23 = vmul.f32 %v397_v18, %v393_v5 }
 0x15e   : > { %v410_v21 = vadd.f32 0.112945676, %v409_v19  ;;  %v399_v29 = vadd.f32 0.05243302, %v398_v23 }
 0x160   : > { %v411_v24 = vmul.f32 %v410_v21, %v393_v5  ;;  %v400_v34 = vmul.f32 %v399_v29, %v393_v5 }
 0x162   : > { %v412_v27 = vadd.f32 0.4994258, %v411_v24  ;;  %v401_v37 = vadd.f32 0.18741608, %v400_v34 }
 0x164   : > { %v413_v30 = vmul.f32 %v412_v27, %v393_v5  ;;  %v402_v40 = vmul.f32 %v401_v37, %v393_v5 }
 0x166   : > { %v414_v32 = vadd.f32 1.0, %v413_v30  ;;  %v403_v44 = vadd.f32 1.1283791, %v402_v40 }
 0x168   : > { %600 = vrcp.f32 %v414_v32  ;;  %v426_v43 = vand.u32 2147483648, %v414_v32  ;;  %v424_v46 = vand.u32 2147483647, %v414_v32  ;;  %vm420_vm6 = vweird.f32 %v414_v32 }
 0x169   : > { %v404_v49 = vmul.f32 %v403_v44, %v828_v2 }
 0x16a   : > { %v427_v48 = vor.u32 1.1754944e-38, %v426_v43  ;;  %vm425_vm8 = vcmp.eq.f32.partialorder %v424_v46, 8.507059e+37 }
 0x16e   : > { %v601_v39 = vpop.eup %600 }
 0x16f   : > { %v416_v41 = vmul.f32 %v601_v39, %v414_v32  ;;  %vm421_vm5 = vweird.f32 %v601_v39 }
 0x170   : > { %vm422_vm7 = vmor %vm420_vm6, %vm421_vm5 }
 0x171   : > { %v417_v42 = vsub.f32 1.0, %v416_v41 }
 0x173   : > { %v418_v45 = vmul.f32 %v601_v39, %v417_v42 }
 0x175   : > { %v419_v47 = vadd.f32 %v601_v39, %v418_v45 }
 0x177   : > { %v423_v50 = vsel %vm422_vm7, %v601_v39, %v419_v47 }
 0x178   : > { %v428_v51 = vsel %vm425_vm8, %v427_v48, %v423_v50 }
 0x179   : > { %v429_v52 = vmul.f32 %v428_v51, %v404_v49 }
 0x17b   : > { %v554_v53 = vclamps-f32 %v429_v52, 1.0 }
 0x17d   : > { %v432_v55 = vadd.f32 1.0, %v554_v53 }
 0x17f   : > { %v433_v56 = vmul.f32 %v432_v55, %v390_v54 }
 0x181   : > { %v434_v57 = vrot.slane %v433_v56, 4 }
 0x183   : > { %v435_v58 = vadd.f32 %v434_v57, %v433_v56 }
 0x185   : > { %v436_v59 = vrot.slane %v435_v58, 2 }
 0x187   : > { %v437_v60 = vadd.f32 %v436_v59, %v435_v58 }
 0x189   : > { %v438_v61 = vrot.slane %v437_v60, 1 }
 0x18b   : > { %v439_v62 = vadd.f32 %v438_v61, %v437_v60 }
 0x18d   : > { %v440_v63 = vmul.f32 0.125, %v439_v62 }
 0x18f   : > { %474 = vmatmul.f32.vlgmr.msra.gmra.mxu2 %v440_v63 }
 0x212   : > { %v475_v1 = vpop.f32.mrf.mxu2 }
 0x213   : > { %v476_v2 = vadd.f32 %v475_v1, %v457_v0 }
 0x215   : > { %478 = vst [vmem:[%s268_s16] sm:$0x1] %v476_v2 }
 0x216   : > { %629 = shalt.err (!%p626_p3)
}
 0x217   : > { %557 = dma.vmem_to_hbm [thread:$0]  (%p744_p5), %s491_s17, 16, %s493_s18, %s480_s19  }
 0x218 PF: > { %p563_p4 = scmp.ge.s32.totalorder %s664_s27, 2  ;;  %s504_s29 = sand.u32 1, %s652_s24  }
 0x219   : > { %s505_s13 = scalar_lea.sflag [#allocation3], %s504_s29 }
 0x21a   : > { %p560_p7 = pnand %p563_p4, %p748_p6 }
 0x21c   : > { %p561_p8 = pneg %p560_p7 }
 0x21e   : > { %647 = dma.done.wait (%p561_p8), %s505_s13, 16  }
 0x21f   : > { %649 = vsyncadd (%p561_p8), %s505_s13, 4294967280  ;;  %p17_p9 = scmp.ge.s32.totalorder %s731_s30, 4   ;;  %s927_s24 = smov %s656_s25 }
 0x220   : > { %s928_s25 = smov %s660_s26  ;;  %s929_s26 = smov %s742_s10 }
 0x221   : > { %s930_s27 = smov %s731_s30  ;;  %19 = sbr.rel (!%p17_p9) target bundleno = 3 (0x3), region = 83 }
 0x226   :  { %510 = vsyncpa [#allocation3], 1 }
 0x227   :  { %512 = vsyncpa [#allocation3 + $0x1], 1 }

</bundles_post_ra>
